<compile_context>
chip_gen: v5e
topology: v5e:2x2
jax: 0.10.0
libtpu: 0.0.40
codegen_flags: <defaults>
</compile_context>

<pallas_src>
import functools
import math

import jax
import jax.numpy as jnp
from jax import lax
from jax.experimental import pallas as pl
from jax.experimental.pallas import tpu as pltpu
import numpy as np

# Mask-type 'B' allowed taps of a 3x3 kernel, as (ky, kx):
# the full row above the centre plus (left, centre) of the centre row.
_MASK_B_TAPS = ((0, 0), (0, 1), (0, 2), (1, 0), (1, 1))


def _block_kernel(x_ref, w1_ref, b1_ref, w2_ref, b2_ref, w3_ref, b3_ref,
                  o_ref, *, W):
    """One block of B images; rows are (b*C + c), lanes are flattened pixels.

    x_ref : (B*C, HW)     f32   input block (channels-of-each-image on sublanes)
    w1_ref: (B*h, B*C)    bf16  block-diag conv1 weight  kron(I_B, W1)
    b1_ref: (B*h, 1)      f32
    w2_ref: (5, B*h, B*h) bf16  per-tap block-diag conv2 weights
    b2_ref: (B*h, 1)      f32
    w3_ref: (B*C, B*h)    bf16  block-diag conv3 weight  kron(I_B, W3)
    b3_ref: (B*C, 1)      f32
    o_ref : (B*C, HW)     f32
    """
    HW = x_ref.shape[-1]
    x = x_ref[...]                                        # (B*C, HW) f32
    a = jnp.maximum(x, 0.0)

    # conv1 (1x1): one MXU matmul covers all B images via the block-diag weight.
    y1 = jnp.dot(w1_ref[...], a.astype(jnp.bfloat16),
                 preferred_element_type=jnp.float32) + b1_ref[...]
    r1 = jnp.maximum(y1, 0.0)                             # (B*h, HW) f32

    # Border-validity lane masks from a lane iota (no mask input stream).
    p = lax.broadcasted_iota(jnp.int32, (1, HW), 1)
    col = (p & (W - 1)) if (W & (W - 1)) == 0 else (p % W)
    not_top = (p >= W).astype(jnp.float32)        # source row  y-1 >= 0
    not_left = (col >= 1).astype(jnp.float32)     # source col  x-1 >= 0
    not_right = (col <= W - 2).astype(jnp.float32)  # source col x+1 <= W-1
    tap_mask = {(-1, -1): not_top * not_left,
                (-1, 0): not_top,
                (-1, 1): not_top * not_right,
                (0, -1): not_left,
                (0, 0): None}

    # conv2 (spatially masked 3x3, mask 'B', padding=1): each unmasked tap is a
    # lane roll of r1 (rows are per-image, so rolls never mix images), border-
    # masked, then accumulated through its own block-diag dot (no concat copy).
    acc = None
    for i, (ky, kx) in enumerate(_MASK_B_TAPS):
        dy, dx = ky - 1, kx - 1
        off = dy * W + dx                                 # <= 0 for mask-'B' taps
        s = r1 if off == 0 else pltpu.roll(r1, shift=-off, axis=1)
        m = tap_mask[(dy, dx)]
        if m is not None:
            s = s * m                                     # (1, HW) bcast over rows
        d = jnp.dot(w2_ref[i], s.astype(jnp.bfloat16),
                    preferred_element_type=jnp.float32)
        acc = d if acc is None else acc + d
    r2 = jnp.maximum(acc + b2_ref[...], 0.0)              # (B*h, HW) f32

    # conv3 (1x1) + residual, both finished in f32.
    y3 = jnp.dot(w3_ref[...], r2.astype(jnp.bfloat16),
                 preferred_element_type=jnp.float32) + b3_ref[...]
    o_ref[...] = (y3 + x).astype(o_ref.dtype)


def _choose_image_block(n_images, C, HW, itemsize=4):
    """Images per grid step.

    Capped so that (a) B*C stays within one 256-wide MXU tile (the block-diag
    weights then add no extra MXU passes; also fine on v5e's 128-wide MXU),
    (b) the double-buffered x/out blocks stay far below every generation's
    scoped-VMEM default (v7x 32 MiB is the binding one), and (c) B*C is a
    multiple of 8 sublanes unless one block covers every image (full-extent
    blocks are always legal).
    """
    mxu_cap = max(1, 256 // C)
    vmem_cap = max(1, (8 << 20) // (4 * C * HW * itemsize))
    cap = min(mxu_cap, vmem_cap)
    if n_images <= cap:
        return n_images
    step = 8 // math.gcd(C, 8)
    return max(step, (cap // step) * step)


def spatial_masked_residual_block_2d(x_nchw, w1, b1, w2, b2, w3, b3):
    """x_nchw: (N, 2h, H, W) f32; params in PyTorch Conv2d layouts (OIHW / (O,))."""
    N, C, H, W = x_nchw.shape
    h = C // 2
    HW = H * W

    B = _choose_image_block(N, C, HW, x_nchw.dtype.itemsize)
    n_blocks = -(-N // B)
    Np = n_blocks * B

    # Free, contiguous view of NCHW: rows are (image, channel), lanes are pixels.
    x2d = x_nchw.reshape(N * C, HW)
    if Np != N:                                   # pad to a whole number of blocks
        x2d = jnp.pad(x2d, ((0, (Np - N) * C), (0, 0)))

    # Block-diagonal weights kron(I_B, W): one matmul drives all B images with no
    # in-kernel relayout.  MXU operands bf16; biases stay f32 (added post-dot).
    eye_b = jnp.eye(B, dtype=jnp.float32)
    w1bd = jnp.kron(eye_b, w1[:, :, 0, 0]).astype(jnp.bfloat16)       # (B*h, B*C)
    w3bd = jnp.kron(eye_b, w3[:, :, 0, 0]).astype(jnp.bfloat16)       # (B*C, B*h)
    w2bd = jnp.stack([jnp.kron(eye_b, w2[:, :, ky, kx])
                      for ky, kx in _MASK_B_TAPS]).astype(jnp.bfloat16)  # (5,B*h,B*h)
    b1t = jnp.tile(b1.reshape(h, 1), (B, 1))                          # (B*h, 1)
    b2t = jnp.tile(b2.reshape(h, 1), (B, 1))                          # (B*h, 1)
    b3t = jnp.tile(b3.reshape(C, 1), (B, 1))                          # (B*C, 1)

    kernel = functools.partial(_block_kernel, W=W)
    const2 = lambda n: (0, 0)
    out2d = pl.pallas_call(
        kernel,
        out_shape=jax.ShapeDtypeStruct((Np * C, HW), x_nchw.dtype),
        grid_spec=pltpu.PrefetchScalarGridSpec(
            num_scalar_prefetch=0,
            grid=(n_blocks,),
            in_specs=[
                pl.BlockSpec((B * C, HW), lambda n: (n, 0)),
                pl.BlockSpec((B * h, B * C), const2),
                pl.BlockSpec((B * h, 1), const2),
                pl.BlockSpec((len(_MASK_B_TAPS), B * h, B * h),
                             lambda n: (0, 0, 0)),
                pl.BlockSpec((B * h, 1), const2),
                pl.BlockSpec((B * C, B * h), const2),
                pl.BlockSpec((B * C, 1), const2),
            ],
            out_specs=pl.BlockSpec((B * C, HW), lambda n: (n, 0)),
        ),
        compiler_params=pltpu.CompilerParams(
            dimension_semantics=("parallel",),
            vmem_limit_bytes=32 * 1024 * 1024),
    )(x2d, w1bd, b1t, w2bd, b2t, w3bd, b3t)

    return out2d[:N * C].reshape(N, C, H, W)


def _ref_forward(x, w1, b1, w2, b2, w3, b3):
    """Pure-JAX f32 reference matching the PyTorch module."""
    dn = ('NCHW', 'OIHW', 'NCHW')
    kH, kW = w2.shape[2], w2.shape[3]
    mask = jnp.ones_like(w2)
    mask = mask.at[:, :, kH // 2, kW // 2 + 1:].set(0.0)   # mask_type == 'B'
    mask = mask.at[:, :, kH // 2 + 1:, :].set(0.0)
    a = jax.nn.relu(x)
    y = lax.conv_general_dilated(a, w1, (1, 1), 'VALID',
                                 dimension_numbers=dn) + b1[None, :, None, None]
    y = jax.nn.relu(y)
    y = lax.conv_general_dilated(y, w2 * mask, (1, 1), ((1, 1), (1, 1)),
                                 dimension_numbers=dn) + b2[None, :, None, None]
    y = jax.nn.relu(y)
    y = lax.conv_general_dilated(y, w3, (1, 1), 'VALID',
                                 dimension_numbers=dn) + b3[None, :, None, None]
    return y + x


if __name__ == "__main__":
    key = jax.random.PRNGKey(0)
    N, h, H, W = 2, 4, 16, 16
    C = 2 * h
    ksize = 3

    k1, k2, k3, k4, k5, k6, kx = jax.random.split(key, 7)
    # Deterministic synthetic parameters in PyTorch Conv2d layouts.
    w1 = jax.random.normal(k1, (h, C, 1, 1), jnp.float32) * 0.1
    b1 = jax.random.normal(k2, (h,), jnp.float32) * 0.1
    w2 = jax.random.normal(k3, (h, h, ksize, ksize), jnp.float32) * 0.1
    b2 = jax.random.normal(k4, (h,), jnp.float32) * 0.1
    w3 = jax.random.normal(k5, (C, h, 1, 1), jnp.float32) * 0.1
    b3 = jax.random.normal(k6, (C,), jnp.float32) * 0.1
    x = jax.random.normal(kx, (N, C, H, W), jnp.float32)   # NCHW, like PyTorch

    out = spatial_masked_residual_block_2d(x, w1, b1, w2, b2, w3, b3)
    out = jax.block_until_ready(out)

    ref = _ref_forward(x, w1, b1, w2, b2, w3, b3)
    assert out.shape == x.shape and out.dtype == x.dtype
    # bf16 MXU operands (f32 accumulation / residual) -> loosen tolerance.
    np.testing.assert_allclose(np.asarray(out), np.asarray(ref),
                               rtol=2e-2, atol=2e-2)
    print("KERNEL_OK")
</pallas_src>

<mosaic_0001>
module attributes {stable_mosaic.version = 11 : i64} {
  func.func @_block_kernel(%arg0: i32, %arg1: memref<16x256xf32, #tpu.memory_space<vmem>>, %arg2: memref<8x16xbf16, #tpu.memory_space<vmem>>, %arg3: memref<8x1xf32, #tpu.memory_space<vmem>>, %arg4: memref<5x8x8xbf16, #tpu.memory_space<vmem>>, %arg5: memref<8x1xf32, #tpu.memory_space<vmem>>, %arg6: memref<16x8xbf16, #tpu.memory_space<vmem>>, %arg7: memref<16x1xf32, #tpu.memory_space<vmem>>, %arg8: memref<16x256xf32, #tpu.memory_space<vmem>>) attributes {dimension_semantics = [#tpu.dimension_semantics<parallel>], iteration_bounds = array<i64: 1>, scalar_prefetch = 0 : i64, scratch_operands = 0 : i64, tpu.core_type = #tpu.core_type<tc>, window_params = [{transform_indices = @transform_0, window_bounds = array<i64: 16, 256>}, {pipeline_mode = #tpu.pipeline_mode<synchronous>, transform_indices = @transform_1, window_bounds = array<i64: 8, 16>}, {pipeline_mode = #tpu.pipeline_mode<synchronous>, transform_indices = @transform_2, window_bounds = array<i64: 8, 1>}, {pipeline_mode = #tpu.pipeline_mode<synchronous>, transform_indices = @transform_3, window_bounds = array<i64: 5, 8, 8>}, {pipeline_mode = #tpu.pipeline_mode<synchronous>, transform_indices = @transform_4, window_bounds = array<i64: 8, 1>}, {pipeline_mode = #tpu.pipeline_mode<synchronous>, transform_indices = @transform_5, window_bounds = array<i64: 16, 8>}, {pipeline_mode = #tpu.pipeline_mode<synchronous>, transform_indices = @transform_6, window_bounds = array<i64: 16, 1>}, {transform_indices = @transform_7, window_bounds = array<i64: 16, 256>}]} {
    %c0 = arith.constant 0 : index
    %c0_0 = arith.constant 0 : index
    %0 = vector.load %arg1[%c0, %c0_0] : memref<16x256xf32, #tpu.memory_space<vmem>>, vector<16x256xf32>
    %cst = arith.constant 0.000000e+00 : f32
    %1 = vector.broadcast %cst : f32 to vector<16x256xf32>
    %2 = arith.maximumf %0, %1 : vector<16x256xf32>
    %c0_1 = arith.constant 0 : index
    %c0_2 = arith.constant 0 : index
    %3 = vector.load %arg2[%c0_1, %c0_2] : memref<8x16xbf16, #tpu.memory_space<vmem>>, vector<8x16xbf16>
    %4 = arith.truncf %2 : vector<16x256xf32> to vector<16x256xbf16>
    %cst_3 = arith.constant dense<0.000000e+00> : vector<8x256xf32>
    %5 = tpu.matmul %3, %4, %cst_3 {dimension_numbers = #tpu.dot_dimension_numbers<[1], [0], [0], [1], [0, 0, 1, 1], [], []>} : vector<8x16xbf16>, vector<16x256xbf16>, vector<8x256xf32> -> vector<8x256xf32>
    %c0_4 = arith.constant 0 : index
    %c0_5 = arith.constant 0 : index
    %6 = vector.load %arg3[%c0_4, %c0_5] : memref<8x1xf32, #tpu.memory_space<vmem>>, vector<8x1xf32>
    %7 = vector.broadcast %6 : vector<8x1xf32> to vector<8x256xf32>
    %8 = arith.addf %5, %7 : vector<8x256xf32>
    %cst_6 = arith.constant 0.000000e+00 : f32
    %9 = vector.broadcast %cst_6 : f32 to vector<8x256xf32>
    %10 = arith.maximumf %8, %9 : vector<8x256xf32>
    %11 = tpu.iota {dimensions = array<i32: 1>} : vector<1x256xi32>
    %c15_i32 = arith.constant 15 : i32
    %12 = vector.broadcast %c15_i32 : i32 to vector<1x256xi32>
    %13 = arith.andi %11, %12 : vector<1x256xi32>
    %c16_i32 = arith.constant 16 : i32
    %14 = vector.broadcast %c16_i32 : i32 to vector<1x256xi32>
    %15 = arith.cmpi sge, %11, %14 : vector<1x256xi32>
    %16 = arith.extui %15 : vector<1x256xi1> to vector<1x256xi32>
    %17 = arith.sitofp %16 : vector<1x256xi32> to vector<1x256xf32>
    %c1_i32 = arith.constant 1 : i32
    %18 = vector.broadcast %c1_i32 : i32 to vector<1x256xi32>
    %19 = arith.cmpi sge, %13, %18 : vector<1x256xi32>
    %20 = arith.extui %19 : vector<1x256xi1> to vector<1x256xi32>
    %21 = arith.sitofp %20 : vector<1x256xi32> to vector<1x256xf32>
    %c14_i32 = arith.constant 14 : i32
    %22 = vector.broadcast %c14_i32 : i32 to vector<1x256xi32>
    %23 = arith.cmpi sle, %13, %22 : vector<1x256xi32>
    %24 = arith.extui %23 : vector<1x256xi1> to vector<1x256xi32>
    %25 = arith.sitofp %24 : vector<1x256xi32> to vector<1x256xf32>
    %26 = arith.mulf %17, %21 : vector<1x256xf32>
    %27 = arith.mulf %17, %25 : vector<1x256xf32>
    %c17_i32 = arith.constant 17 : i32
    %28 = tpu.dynamic_rotate %10 by %c17_i32 dim 1 : vector<8x256xf32>, i32 -> vector<8x256xf32>
    %29 = vector.broadcast %26 : vector<1x256xf32> to vector<8x256xf32>
    %30 = arith.mulf %28, %29 : vector<8x256xf32>
    %c0_7 = arith.constant 0 : index
    %c0_8 = arith.constant 0 : index
    %c0_9 = arith.constant 0 : index
    %31 = vector.load %arg4[%c0_7, %c0_8, %c0_9] : memref<5x8x8xbf16, #tpu.memory_space<vmem>>, vector<1x8x8xbf16>
    %32 = vector.shape_cast %31 : vector<1x8x8xbf16> to vector<8x8xbf16>
    %33 = arith.truncf %30 : vector<8x256xf32> to vector<8x256xbf16>
    %cst_10 = arith.constant dense<0.000000e+00> : vector<8x256xf32>
    %34 = tpu.matmul %32, %33, %cst_10 {dimension_numbers = #tpu.dot_dimension_numbers<[1], [0], [0], [1], [0, 0, 1, 1], [], []>} : vector<8x8xbf16>, vector<8x256xbf16>, vector<8x256xf32> -> vector<8x256xf32>
    %c16_i32_11 = arith.constant 16 : i32
    %35 = tpu.dynamic_rotate %10 by %c16_i32_11 dim 1 : vector<8x256xf32>, i32 -> vector<8x256xf32>
    %36 = vector.broadcast %17 : vector<1x256xf32> to vector<8x256xf32>
    %37 = arith.mulf %35, %36 : vector<8x256xf32>
    %c1 = arith.constant 1 : index
    %c0_12 = arith.constant 0 : index
    %c0_13 = arith.constant 0 : index
    %38 = vector.load %arg4[%c1, %c0_12, %c0_13] : memref<5x8x8xbf16, #tpu.memory_space<vmem>>, vector<1x8x8xbf16>
    %39 = vector.shape_cast %38 : vector<1x8x8xbf16> to vector<8x8xbf16>
    %40 = arith.truncf %37 : vector<8x256xf32> to vector<8x256xbf16>
    %cst_14 = arith.constant dense<0.000000e+00> : vector<8x256xf32>
    %41 = tpu.matmul %39, %40, %cst_14 {dimension_numbers = #tpu.dot_dimension_numbers<[1], [0], [0], [1], [0, 0, 1, 1], [], []>} : vector<8x8xbf16>, vector<8x256xbf16>, vector<8x256xf32> -> vector<8x256xf32>
    %42 = arith.addf %34, %41 : vector<8x256xf32>
    %c15_i32_15 = arith.constant 15 : i32
    %43 = tpu.dynamic_rotate %10 by %c15_i32_15 dim 1 : vector<8x256xf32>, i32 -> vector<8x256xf32>
    %44 = vector.broadcast %27 : vector<1x256xf32> to vector<8x256xf32>
    %45 = arith.mulf %43, %44 : vector<8x256xf32>
    %c2 = arith.constant 2 : index
    %c0_16 = arith.constant 0 : index
    %c0_17 = arith.constant 0 : index
    %46 = vector.load %arg4[%c2, %c0_16, %c0_17] : memref<5x8x8xbf16, #tpu.memory_space<vmem>>, vector<1x8x8xbf16>
    %47 = vector.shape_cast %46 : vector<1x8x8xbf16> to vector<8x8xbf16>
    %48 = arith.truncf %45 : vector<8x256xf32> to vector<8x256xbf16>
    %cst_18 = arith.constant dense<0.000000e+00> : vector<8x256xf32>
    %49 = tpu.matmul %47, %48, %cst_18 {dimension_numbers = #tpu.dot_dimension_numbers<[1], [0], [0], [1], [0, 0, 1, 1], [], []>} : vector<8x8xbf16>, vector<8x256xbf16>, vector<8x256xf32> -> vector<8x256xf32>
    %50 = arith.addf %42, %49 : vector<8x256xf32>
    %c1_i32_19 = arith.constant 1 : i32
    %51 = tpu.dynamic_rotate %10 by %c1_i32_19 dim 1 : vector<8x256xf32>, i32 -> vector<8x256xf32>
    %52 = vector.broadcast %21 : vector<1x256xf32> to vector<8x256xf32>
    %53 = arith.mulf %51, %52 : vector<8x256xf32>
    %c3 = arith.constant 3 : index
    %c0_20 = arith.constant 0 : index
    %c0_21 = arith.constant 0 : index
    %54 = vector.load %arg4[%c3, %c0_20, %c0_21] : memref<5x8x8xbf16, #tpu.memory_space<vmem>>, vector<1x8x8xbf16>
    %55 = vector.shape_cast %54 : vector<1x8x8xbf16> to vector<8x8xbf16>
    %56 = arith.truncf %53 : vector<8x256xf32> to vector<8x256xbf16>
    %cst_22 = arith.constant dense<0.000000e+00> : vector<8x256xf32>
    %57 = tpu.matmul %55, %56, %cst_22 {dimension_numbers = #tpu.dot_dimension_numbers<[1], [0], [0], [1], [0, 0, 1, 1], [], []>} : vector<8x8xbf16>, vector<8x256xbf16>, vector<8x256xf32> -> vector<8x256xf32>
    %58 = arith.addf %50, %57 : vector<8x256xf32>
    %c4 = arith.constant 4 : index
    %c0_23 = arith.constant 0 : index
    %c0_24 = arith.constant 0 : index
    %59 = vector.load %arg4[%c4, %c0_23, %c0_24] : memref<5x8x8xbf16, #tpu.memory_space<vmem>>, vector<1x8x8xbf16>
    %60 = vector.shape_cast %59 : vector<1x8x8xbf16> to vector<8x8xbf16>
    %61 = arith.truncf %10 : vector<8x256xf32> to vector<8x256xbf16>
    %cst_25 = arith.constant dense<0.000000e+00> : vector<8x256xf32>
    %62 = tpu.matmul %60, %61, %cst_25 {dimension_numbers = #tpu.dot_dimension_numbers<[1], [0], [0], [1], [0, 0, 1, 1], [], []>} : vector<8x8xbf16>, vector<8x256xbf16>, vector<8x256xf32> -> vector<8x256xf32>
    %63 = arith.addf %58, %62 : vector<8x256xf32>
    %c0_26 = arith.constant 0 : index
    %c0_27 = arith.constant 0 : index
    %64 = vector.load %arg5[%c0_26, %c0_27] : memref<8x1xf32, #tpu.memory_space<vmem>>, vector<8x1xf32>
    %65 = vector.broadcast %64 : vector<8x1xf32> to vector<8x256xf32>
    %66 = arith.addf %63, %65 : vector<8x256xf32>
    %cst_28 = arith.constant 0.000000e+00 : f32
    %67 = vector.broadcast %cst_28 : f32 to vector<8x256xf32>
    %68 = arith.maximumf %66, %67 : vector<8x256xf32>
    %c0_29 = arith.constant 0 : index
    %c0_30 = arith.constant 0 : index
    %69 = vector.load %arg6[%c0_29, %c0_30] : memref<16x8xbf16, #tpu.memory_space<vmem>>, vector<16x8xbf16>
    %70 = arith.truncf %68 : vector<8x256xf32> to vector<8x256xbf16>
    %cst_31 = arith.constant dense<0.000000e+00> : vector<16x256xf32>
    %71 = tpu.matmul %69, %70, %cst_31 {dimension_numbers = #tpu.dot_dimension_numbers<[1], [0], [0], [1], [0, 0, 1, 1], [], []>} : vector<16x8xbf16>, vector<8x256xbf16>, vector<16x256xf32> -> vector<16x256xf32>
    %c0_32 = arith.constant 0 : index
    %c0_33 = arith.constant 0 : index
    %72 = vector.load %arg7[%c0_32, %c0_33] : memref<16x1xf32, #tpu.memory_space<vmem>>, vector<16x1xf32>
    %73 = vector.broadcast %72 : vector<16x1xf32> to vector<16x256xf32>
    %74 = arith.addf %71, %73 : vector<16x256xf32>
    %75 = arith.addf %74, %0 : vector<16x256xf32>
    %c0_34 = arith.constant 0 : index
    %c0_35 = arith.constant 0 : index
    %76 = vector.load %arg8[%c0_34, %c0_35] : memref<16x256xf32, #tpu.memory_space<vmem>>, vector<16x256xf32>
    tpu.vector_store %arg8[%c0_34, %c0_35], %75 {strides = array<i32>} : memref<16x256xf32, #tpu.memory_space<vmem>>, vector<16x256xf32>,
    return
  }
  func.func @transform_0(%arg0: i32) -> (i32, i32) {
    %c0_i32 = arith.constant 0 : i32
    %c0_i32_0 = arith.constant 0 : i32
    return %arg0, %c0_i32 : i32, i32
  }
  func.func @transform_1(%arg0: i32) -> (i32, i32) {
    %c0_i32 = arith.constant 0 : i32
    %c0_i32_0 = arith.constant 0 : i32
    %c0_i32_1 = arith.constant 0 : i32
    return %c0_i32, %c0_i32_0 : i32, i32
  }
  func.func @transform_2(%arg0: i32) -> (i32, i32) {
    %c0_i32 = arith.constant 0 : i32
    %c0_i32_0 = arith.constant 0 : i32
    %c0_i32_1 = arith.constant 0 : i32
    return %c0_i32, %c0_i32_0 : i32, i32
  }
  func.func @transform_3(%arg0: i32) -> (i32, i32, i32) {
    %c0_i32 = arith.constant 0 : i32
    %c0_i32_0 = arith.constant 0 : i32
    %c0_i32_1 = arith.constant 0 : i32
    %c0_i32_2 = arith.constant 0 : i32
    return %c0_i32, %c0_i32_0, %c0_i32_1 : i32, i32, i32
  }
  func.func @transform_4(%arg0: i32) -> (i32, i32) {
    %c0_i32 = arith.constant 0 : i32
    %c0_i32_0 = arith.constant 0 : i32
    %c0_i32_1 = arith.constant 0 : i32
    return %c0_i32, %c0_i32_0 : i32, i32
  }
  func.func @transform_5(%arg0: i32) -> (i32, i32) {
    %c0_i32 = arith.constant 0 : i32
    %c0_i32_0 = arith.constant 0 : i32
    %c0_i32_1 = arith.constant 0 : i32
    return %c0_i32, %c0_i32_0 : i32, i32
  }
  func.func @transform_6(%arg0: i32) -> (i32, i32) {
    %c0_i32 = arith.constant 0 : i32
    %c0_i32_0 = arith.constant 0 : i32
    %c0_i32_1 = arith.constant 0 : i32
    return %c0_i32, %c0_i32_0 : i32, i32
  }
  func.func @transform_7(%arg0: i32) -> (i32, i32) {
    %c0_i32 = arith.constant 0 : i32
    %c0_i32_0 = arith.constant 0 : i32
    return %arg0, %c0_i32 : i32, i32
  }
}

</mosaic_0001>

<bundles_post_ra>
// kernel: tpu_custom_call.1
= control target key start
LH: loop header
LB: loop body
LE: loop exit
PB: predicated region body
PF: predicated region fallthrough
CT: control target
= control target key end

     0   :  { %12 = vsyncpa [#allocation3], 0  ;;  %s706_s0 = inlined_call_operand.hbm [shape: f32[16,256], index: 0, kind: input, shape index: {}]   ;;  %s707_s1 = inlined_call_operand.vmem [shape: bf16[8,16], index: 1, kind: input, shape index: {}]   ;;  %s708_s2 = inlined_call_operand.vmem [shape: f32[8,1], index: 2, kind: input, shape index: {}]   ;;  %s709_s3 = inlined_call_operand.vmem [shape: bf16[5,8,8], index: 3, kind: input, shape index: {}]   ;;  %s710_s4 = inlined_call_operand.vmem [shape: f32[8,1], index: 4, kind: input, shape index: {}]   ;;  %s711_s5 = inlined_call_operand.vmem [shape: bf16[16,8], index: 5, kind: input, shape index: {}]   ;;  %s712_s6 = inlined_call_operand.vmem [shape: f32[16,1], index: 6, kind: input, shape index: {}]   ;;  %s713_s7 = inlined_call_operand.hbm [shape: f32[16,256], index: 7, kind: output, shape index: {}]  }
   0x1   :  { %13 = vsyncpa [#allocation4], 0  ;;  %s18_s26 = sshll.u32 %s706_s0, 4  ;;  %s545_s27 = smov [#allocation2]   ;;  %s19_s26 = int_to_ptr.hbm [resolvable:$true] %s18_s26 }
   0x2   :  { %s20_s28 = sshll.u32 %s545_s27, 4  ;;  %s546_s29 = smov 256   ;;  %s21_s28 = int_to_ptr.vmem [resolvable:$true] %s20_s28 }
   0x3   :  { %s547_s30 = smov 16  }
   0x4   :  { %26 = dma.hbm_to_vmem [thread:$0]  %s19_s26, 512, %s21_s28, [#allocation3], %s546_s29, %s546_s29, %s547_s30  }
   0x5   :  { %541 = dma.done.wait [#allocation3], 512  }
   0x6   :  { %542 = vsyncadd [#allocation3], 4294966784  ;;  %v548_v0 = vmov 0   ;;  %v600_v1 = vld [vmem:[#allocation2] sm:$0xff]  ;;  %v602_v2 = vld [vmem:[#allocation2 + $0x10] sm:$0xff]  ;;  %vm61_vm0 = vcmask 130048   ;;  %v93_v23 = vlaneseq }
   0x7   :  { %490 = vset.pattern.permute.xlu0 %v548_v0  ;;  %491 = vset.pattern.permute.xlu1 %v548_v0  ;;  %v604_v3 = vld [vmem:[#allocation2 + $0x8] sm:$0xff]  ;;  %v48_v4 = vmax.f32 %v600_v1, 0.0  ;;  %v50_v5 = vmax.f32 %v602_v2, 0.0  ;;  %v608_v6 = vld [vmem:[#allocation2 + $0x18] sm:$0xff]  ;;  %v55_v9 = vld [vmem:[%s708_s2] sm:$0xff]  ;;  %s549_s2 = smov 15  }
   0x8   :  { %492 = vset.pattern.permute.xlu2 %v548_v0  ;;  %v49_v7 = vmax.f32 %v604_v3, 0.0  ;;  %v51_v8 = vmax.f32 %v608_v6, 0.0  ;;  %58 = vperm.xlu0 %490, %v55_v9   ;;  %v52_v12 = vld [vmem:[%s707_s1] sm:$0xf]  ;;  %s550_s1 = smov 17   ;;  %s551_s13 = smov 1  }
   0x9   :  { %v53_v10 = vpack.c.bf16 %v50_v5, %v48_v4  ;;  %v358_v22 = vld [vmem:[%s710_s4] sm:$0xff]  ;;  %v635_v24 = vand.u32 127, %v93_v23  ;;  %v552_v29 = vmov 0.0   ;;  %vm149_vm5 = vcmask 1043456   ;;  %v471_v23 = vld [vmem:[%s709_s3 + $0x10] sm:$0xf] }
   0xa   :  { %v54_v11 = vpack.c.bf16 %v51_v8, %v49_v7  ;;  %v460_v41 = vld [vmem:[%s709_s3 + $0x4] sm:$0xf]  ;;  %vm145_vm8 = vcmask 64512   ;;  %v129_v8 = vld [vmem:[%s709_s3] sm:$0xf]  ;;  %s440_s8 = sshll.u32 %s713_s7, 4  ;;  %s441_s8 = int_to_ptr.hbm [resolvable:$true] %s440_s8 }
   0xb   :  { %72 = vmatpush.bf16.msra.mxu0 %v53_v10  ;;  %v95_v25 = vadd.s32 128, %v635_v24  ;;  %v96_v26 = vand.u32 15, %v635_v24  ;;  %vm98_vm1 = vcmp.ge.s32.totalorder %v635_v24, 16  ;;  %vm136_vm2 = vcmp.lt.s32.totalorder %v635_v24, 16 }
   0xc   :  { %85 = vmatpush.bf16.msra.mxu1 %v54_v11  ;;  %v455_v30 = vsel %vm98_vm1, 1.0, %v552_v29  ;;  %vm124_vm9 = vcmp.lt.s32.totalorder %v635_v24, 17  ;;  %vm221_vm10 = vcmp.lt.s32.totalorder %v635_v24, 15  ;;  %vm271_vm11 = vcmp.lt.s32.totalorder %v635_v24, 1 }
   0xd   :  { %v97_v31 = vand.u32 15, %v95_v25  ;;  %vm104_vm3 = vcmp.ge.s32.totalorder %v96_v26, 1  ;;  %vm110_vm4 = vcmp.le.s32.totalorder %v96_v26, 14 }
   0xe   :  { %453 = vmatmul.msk.bf16.vlgmr.msra.gmra.mxu0 %vm61_vm0, %v52_v12  ;;  %v456_v37 = vsel %vm104_vm3, 1.0, %v552_v29  ;;  %v458_v38 = vsel %vm110_vm4, 1.0, %v552_v29 }
   0xf   :  { %454 = vmatmul.msk.bf16.vlgmr.msra.gmra.mxu1 %vm61_vm0, %v52_v12  ;;  %vm105_vm6 = vcmp.ge.s32.totalorder %v97_v31, 1  ;;  %vm111_vm7 = vcmp.le.s32.totalorder %v97_v31, 14  ;;  %v116_v42 = vmul.f32 %v456_v37, %v455_v30  ;;  %v118_v45 = vmul.f32 %v458_v38, %v455_v30 }
  0x10   :  { %v457_v46 = vsel %vm105_vm6, 1.0, %v552_v29  ;;  %v459_v47 = vsel %vm111_vm7, 1.0, %v552_v29 }
  0x7a   :  { %v59_v13 = vpop.permute.xlu0 %58 }
  0x8b   :  { %v74_v14 = vpop.f32.mrf.mxu0 }
  0x8c   :  { %v75_v15 = vadd.f32 %v74_v14, %v59_v13  ;;  %v87_v16 = vpop.f32.mrf.mxu1 }
  0x8d   :  { %v88_v17 = vadd.f32 %v87_v16, %v59_v13 }
  0x8e   :  { %v618_v18 = vmax.f32 %v75_v15, 0.0 }
  0x8f   :  { %v620_v19 = vmax.f32 %v88_v17, 0.0 }
  0x90   :  { %132 = vrot.lane.b32.xlu0 %v618_v18, %s547_s30  ;;  %v319_v61 = vpack.c.bf16 %v618_v18, %v618_v18 }
  0x91   :  { %219 = vrot.lane.b32.xlu2 %v620_v19, %s549_s2  ;;  %134 = vrot.lane.b32.xlu1 %v620_v19, %s547_s30  ;;  %v320_v60 = vpack.c.bf16 %v620_v19, %v620_v19 }
  0x92   :  { %v325_v10 = vsel %vm149_vm5, %v319_v61, 0  ;;  %v480_v61 = vld [vmem:[%s711_s5] sm:$0xff]  ;;  %s553_s5 = smov [#allocation5]  }
  0x93   :  { %v76_v20 = vpop.f32.mrf.mxu0  ;;  %v328_v9 = vsel %vm149_vm5, %v320_v60, 0  ;;  %s438_s27 = sshll.u32 %s553_s5, 4  ;;  %s439_s27 = int_to_ptr.vmem [resolvable:$true] %s438_s27 }
  0x94   :  { %v89_v21 = vpop.f32.mrf.mxu1 }
  0x98   :  { %122 = vrot.lane.b32.xlu0 %v620_v19, %s550_s1 }
  0x99   :  { %120 = vrot.lane.b32.xlu2 %v618_v18, %s550_s1  ;;  %217 = vrot.lane.b32.xlu1 %v618_v18, %s549_s2 }
  0xa0   :  { %361 = vperm.xlu0 %490, %v358_v22   ;;  %v468_v22 = vld [vmem:[%s709_s3 + $0xc] sm:$0xf] }
  0xa1   :  { %269 = vrot.lane.b32.xlu2 %v620_v19, %s551_s13  ;;  %267 = vrot.lane.b32.xlu1 %v618_v18, %s551_s13  ;;  %v465_v19 = vld [vmem:[%s709_s3 + $0x8] sm:$0xf] }
  0xeb   :  { %v220_v27 = vpop.permute.xlu2 %219 }
  0xf3   :  { %v121_v43 = vpop.permute.xlu2 %120 }
  0xfb   :  { %v270_v11 = vpop.permute.xlu2 %269 }
 0x102   :  { %v133_v28 = vpop.permute.xlu0 %132 }
 0x103   :  { %v135_v32 = vpop.permute.xlu1 %134 }
 0x104   :  { %v137_v33 = vsel %vm136_vm2, %v133_v28, %v135_v32  ;;  %v138_v34 = vsel %vm136_vm2, %v135_v32, %v133_v28  ;;  %v372_v32 = vld [vmem:[%s712_s6] sm:$0xff] }
 0x105   :  { %v144_v35 = vpack.c.bf16 %v137_v33, %v137_v33  ;;  %v139_v36 = vmul.f32 %v455_v30, %v138_v34  ;;  %v373_v33 = vld [vmem:[%s712_s6 + $0x8] sm:$0xff]  ;;  %376 = vperm.xlu1 %491, %v372_v32  }
 0x106   :  { %381 = vperm.xlu2 %492, %v373_v33  }
 0x107   :  { %v154_v39 = vsel %vm149_vm5, %v144_v35, 0  ;;  %v143_v40 = vpack.c.bf16 %v139_v36, %v139_v36 }
 0x108   :  { %176 = vmatpush.bf16.msra.mxu3 %v154_v39 }
 0x109   :  { %v151_v44 = vsel %vm149_vm5, %v143_v40, 0 }
 0x10a   :  { %163 = vmatpush.bf16.msra.mxu2 %v151_v44  ;;  %v123_v48 = vpop.permute.xlu0 %122 }
 0x10b   :  { %v218_v49 = vpop.permute.xlu1 %217  ;;  %462 = vmatmul.msk.bf16.vlgmr.msra.gmra.mxu3 %vm145_vm8, %v460_v41  ;;  %v125_v50 = vsel %vm124_vm9, %v121_v43, %v123_v48  ;;  %v126_v51 = vsel %vm124_vm9, %v123_v48, %v121_v43 }
 0x10c   :  { %v222_v52 = vsel %vm221_vm10, %v218_v49, %v220_v27  ;;  %v223_v53 = vsel %vm221_vm10, %v220_v27, %v218_v49  ;;  %v127_v54 = vmul.f32 %v126_v51, %v116_v42  ;;  %v128_v55 = vmul.f32 %v457_v46, %v125_v50 }
 0x10d   :  { %v224_v56 = vmul.f32 %v223_v53, %v118_v45  ;;  %v225_v57 = vmul.f32 %v459_v47, %v222_v52  ;;  %461 = vmatmul.msk.bf16.vlgmr.msra.gmra.mxu2 %vm145_vm8, %v460_v41 }
 0x10e   :  { %v130_v58 = vpack.c.bf16 %v127_v54, %v127_v54  ;;  %v131_v59 = vpack.c.bf16 %v128_v55, %v128_v55 }
 0x10f   :  { %v228_v62 = vpack.c.bf16 %v224_v56, %v224_v56  ;;  %v229_v63 = vpack.c.bf16 %v225_v57, %v225_v57 }
 0x110   :  { %v186_v0 = vsel %vm149_vm5, %v130_v58, 0  ;;  %v189_v4 = vsel %vm149_vm5, %v131_v59, 0 }
 0x111   :  { %198 = vmatpush.bf16.msrb.mxu0 %v186_v0  ;;  %211 = vmatpush.bf16.msrb.mxu1 %v189_v4  ;;  %v234_v5 = vsel %vm149_vm5, %v228_v62, 0  ;;  %v237_v7 = vsel %vm149_vm5, %v229_v63, 0 }
 0x112   :  { %246 = vmatpush.bf16.msrb.mxu2 %v234_v5  ;;  %259 = vmatpush.bf16.msrb.mxu3 %v237_v7  ;;  %v362_v50 = vpop.permute.xlu0 %361 }
 0x113   :  { %v268_v12 = vpop.permute.xlu1 %267 }
 0x114   :  { %v272_v13 = vsel %vm271_vm11, %v268_v12, %v270_v11  ;;  %v273_v14 = vsel %vm271_vm11, %v270_v11, %v268_v12  ;;  %463 = vmatmul.msk.bf16.vlgmr.msrb.gmra.mxu0 %vm145_vm8, %v129_v8  ;;  %464 = vmatmul.msk.bf16.vlgmr.msrb.gmra.mxu1 %vm145_vm8, %v129_v8 }
 0x115   :  { %v274_v15 = vmul.f32 %v456_v37, %v273_v14  ;;  %v275_v16 = vmul.f32 %v457_v46, %v272_v13 }
 0x116   :  { %350 = vmatpush.bf16.msra.mxu3 %v328_v9  ;;  %337 = vmatpush.bf16.msra.mxu2 %v325_v10 }
 0x117   :  { %v278_v17 = vpack.c.bf16 %v274_v15, %v274_v15  ;;  %v279_v18 = vpack.c.bf16 %v275_v16, %v275_v16 }
 0x119   :  { %v284_v20 = vsel %vm149_vm5, %v278_v17, 0  ;;  %v287_v21 = vsel %vm149_vm5, %v279_v18, 0 }
 0x11a   :  { %296 = vmatpush.bf16.msra.mxu0 %v284_v20  ;;  %309 = vmatpush.bf16.msra.mxu1 %v287_v21 }
 0x11b   :  { %467 = vmatmul.msk.bf16.vlgmr.msrb.gmra.mxu3 %vm145_vm8, %v465_v19 }
 0x11d   :  { %466 = vmatmul.msk.bf16.vlgmr.msrb.gmra.mxu2 %vm145_vm8, %v465_v19 }
 0x124   :  { %469 = vmatmul.msk.bf16.vlgmr.msra.gmra.mxu0 %vm145_vm8, %v468_v22  ;;  %470 = vmatmul.msk.bf16.vlgmr.msra.gmra.mxu1 %vm145_vm8, %v468_v22 }
 0x12b   :  { %473 = vmatmul.msk.bf16.vlgmr.msra.gmra.mxu3 %vm145_vm8, %v471_v23 }
 0x12d   :  { %472 = vmatmul.msk.bf16.vlgmr.msra.gmra.mxu2 %vm145_vm8, %v471_v23 }
 0x160   :  { %v382_v11 = vpop.permute.xlu2 %381 }
 0x177   :  { %v377_v0 = vpop.permute.xlu1 %376 }
 0x18e   :  { %v178_v24 = vpop.f32.mrf.mxu3 }
 0x190   :  { %v165_v25 = vpop.f32.mrf.mxu2 }
 0x191   :  { %v200_v26 = vpop.f32.mrf.mxu0  ;;  %v213_v27 = vpop.f32.mrf.mxu1 }
 0x192   :  { %v201_v40 = vadd.f32 %v200_v26, %v165_v25  ;;  %v214_v41 = vadd.f32 %v213_v27, %v178_v24 }
 0x196   :  { %v180_v28 = vpop.f32.mrf.mxu3 }
 0x198   :  { %v167_v29 = vpop.f32.mrf.mxu2 }
 0x199   :  { %v202_v30 = vpop.f32.mrf.mxu0  ;;  %v215_v31 = vpop.f32.mrf.mxu1 }
 0x19e   :  { %v261_v34 = vpop.f32.mrf.mxu3 }
 0x19f   :  { %v266_v44 = vadd.f32 %v261_v34, %v214_v41 }
 0x1a0   :  { %v248_v35 = vpop.f32.mrf.mxu2 }
 0x1a1   :  { %v298_v36 = vpop.f32.mrf.mxu0  ;;  %v311_v37 = vpop.f32.mrf.mxu1  ;;  %v265_v45 = vadd.f32 %v248_v35, %v201_v40 }
 0x1a2   :  { %v316_v46 = vadd.f32 %v311_v37, %v266_v44 }
 0x1a3   :  { %v315_v48 = vadd.f32 %v298_v36, %v265_v45 }
 0x1a6   :  { %v263_v38 = vpop.f32.mrf.mxu3 }
 0x1a8   :  { %v250_v39 = vpop.f32.mrf.mxu2 }
 0x1a9   :  { %v300_v42 = vpop.f32.mrf.mxu0  ;;  %v313_v43 = vpop.f32.mrf.mxu1 }
 0x1ae   :  { %v352_v47 = vpop.f32.mrf.mxu3 }
 0x1af   :  { %v357_v49 = vadd.f32 %v352_v47, %v316_v46 }
 0x1b0   :  { %v339_v51 = vpop.f32.mrf.mxu2 }
 0x1b1   :  { %v365_v52 = vadd.f32 %v362_v50, %v357_v49  ;;  %v356_v53 = vadd.f32 %v339_v51, %v315_v48 }
 0x1b3   :  { %v367_v54 = vmax.f32 %v365_v52, 0.0  ;;  %v364_v55 = vadd.f32 %v362_v50, %v356_v53 }
 0x1b5   :  { %v371_v56 = vpack.c.bf16 %v367_v54, %v367_v54  ;;  %v366_v57 = vmax.f32 %v364_v55, 0.0 }
 0x1b6   :  { %v354_v58 = vpop.f32.mrf.mxu3 }
 0x1b7   :  { %v370_v59 = vpack.c.bf16 %v366_v57, %v366_v57  ;;  %v396_v60 = vsel %vm149_vm5, %v371_v56, 0 }
 0x1b8   :  { %v341_v62 = vpop.f32.mrf.mxu2  ;;  %419 = vmatpush.bf16.msrb.mxu1 %v396_v60 }
 0x1b9   :  { %v393_v63 = vsel %vm149_vm5, %v370_v59, 0 }
 0x1ba   :  { %405 = vmatpush.bf16.msrb.mxu0 %v393_v63 }
 0x1bb   :  { %479 = vmatmul.msk.bf16.vlgmr.msrb.gmra.mxu1 %vm145_vm8, %v480_v61 }
 0x1bd   :  { %478 = vmatmul.msk.bf16.vlgmr.msrb.gmra.mxu0 %vm145_vm8, %v480_v61 }
 0x238   :  { %v421_v4 = vpop.f32.mrf.mxu1 }
 0x239   :  { %v422_v5 = vadd.f32 %v421_v4, %v377_v0 }
 0x23a   :  { %v407_v7 = vpop.f32.mrf.mxu0 }
 0x23b   :  { %v408_v8 = vadd.f32 %v407_v7, %v377_v0  ;;  %v427_v9 = vadd.f32 %v422_v5, %v604_v3 }
 0x23d   :  { %v426_v10 = vadd.f32 %v408_v8, %v600_v1  ;;  %431 = vst [vmem:[#allocation5 + $0x8] sm:$0xff] %v427_v9 }
 0x23f   :  { %430 = vst [vmem:[#allocation5] sm:$0xff] %v426_v10 }
 0x240   :  { %v423_v12 = vpop.f32.mrf.mxu1 }
 0x241   :  { %v424_v13 = vadd.f32 %v423_v12, %v382_v11 }
 0x242   :  { %v409_v14 = vpop.f32.mrf.mxu0 }
 0x243   :  { %v410_v15 = vadd.f32 %v409_v14, %v382_v11  ;;  %v429_v16 = vadd.f32 %v424_v13, %v608_v6 }
 0x245   :  { %v428_v17 = vadd.f32 %v410_v15, %v602_v2  ;;  %433 = vst [vmem:[#allocation5 + $0x18] sm:$0xff] %v429_v16 }
 0x247   :  { %432 = vst [vmem:[#allocation5 + $0x10] sm:$0xff] %v428_v17 }
 0x248   :  { %446 = dma.vmem_to_hbm [thread:$0]  %s439_s27, 512, %s441_s8, [#allocation4], %s546_s29, %s546_s29, %s547_s30  }
 0x249   :  { %543 = dma.done.wait [#allocation4], 512  }
 0x24a   :  { %544 = vsyncadd [#allocation4], 4294966784 }
 0x24b   :  { %451 = vsyncpa [#allocation3], 1 }
 0x24c   :  { %452 = vsyncpa [#allocation4], 1 }

</bundles_post_ra>
